<compile_context>
chip_gen: v7x
topology: tpu7x:2x2x1
jax: 0.10.0
libtpu: 0.0.40
codegen_flags: <defaults>
</compile_context>

<pallas_src>
from functools import partial

import jax
import jax.numpy as jnp
from jax.experimental import pallas as pl
from jax.experimental.pallas import tpu as pltpu


# ----------------------------------------------------------------------------
# Small helpers
# ----------------------------------------------------------------------------
def _round_up(x, m):
    return ((x + m - 1) // m) * m


def _divisors(n):
    ds = set()
    i = 1
    while i * i <= n:
        if n % i == 0:
            ds.add(i)
            ds.add(n // i)
        i += 1
    return sorted(ds)


def _sublane_multiple(dtype):
    # A vreg tile is (8, 128) x 32-bit; sub-32-bit dtypes pack 2x / 4x rows per sublane.
    return 8 * max(1, 4 // jnp.dtype(dtype).itemsize)


def _vmem_capacity_bytes():
    try:
        info = pltpu.get_tpu_info()
        for attr in ("vmem_capacity_bytes", "vmem_size_bytes"):
            cap = getattr(info, attr, None)
            if cap:
                return int(cap)
    except Exception:
        pass
    return 64 << 20  # conservative: v7x has the smallest physical VMEM (64 MiB)


def _choose_tiles(b, chwp, sub, per_elem_bytes, budget_bytes):
    """Pick (batch_tile, lane_tile).

    batch_tile is a multiple of `sub` (or the full batch), lane_tile is a
    multiple of 128 dividing the padded flat axis — so every block satisfies the
    (8,128) rule with zero masked stores.  Sublane padding is accounted for in
    the VMEM estimate.  Prefers the largest block that fits, then shrinks to keep
    >= 4 "parallel" grid steps (v7x dual-TensorCore occupancy).
    """
    max_elems = max(1, budget_bytes // per_elem_bytes)

    bt_cands = sorted({d for d in _divisors(b) if d % sub == 0} | {b})
    ct_cands = sorted(d for d in _divisors(chwp) if d % 128 == 0)  # non-empty: 128 | chwp

    def fits(bt_, ct_):
        return _round_up(bt_, sub) * ct_ <= max_elems

    bt, ct = min(bt_cands), min(ct_cands)
    for cand_bt in bt_cands:
        for cand_ct in ct_cands:
            if fits(cand_bt, cand_ct) and cand_bt * cand_ct > bt * ct:
                bt, ct = cand_bt, cand_ct

    def par_steps(bt_, ct_):
        return (b // bt_) * (chwp // ct_)

    while par_steps(bt, ct) < 4:
        smaller_bt = [d for d in bt_cands if d < bt]
        smaller_ct = [d for d in ct_cands if d < ct]
        if smaller_bt:        # prefer splitting batch
            bt = max(smaller_bt)
        elif smaller_ct:
            ct = max(smaller_ct)
        else:
            break
    return bt, ct


# ----------------------------------------------------------------------------
# Pallas kernel: Fourier feature encoding (elementwise, HBM-writeback bound)
# ----------------------------------------------------------------------------
def _fourier_encode_kernel(x_ref, o_ref, trig_ref, *, freqs, use_double_angle):
    # x_ref:    (bt, ct)          flat (channels+spatial) lane-dense input block
    # o_ref:    (bt, ct)          one output slab block (slab = innermost grid axis)
    # trig_ref: (2*nF, bt, ct)    scratch: rows [0..nF) = sin slabs, [nF..2nF) = cos slabs
    nf = len(freqs)
    s = pl.program_id(2)  # slab index: 0 = identity, 1..nF = sin, nF+1..2nF = cos

    @pl.when(s == 0)
    def _():
        # Identity slab + precompute every sin/cos slab for this tile exactly once.
        # Force f32 math even for low-precision inputs (bf16 range reduction at
        # |arg| ~ O(100) is numerically useless; v5e has no bf16 VPU/EUP anyway).
        x = x_ref[...].astype(jnp.float32)
        o_ref[...] = x.astype(o_ref.dtype)
        prev = None  # (freq, sin, cos) of the previous ladder rung (f32 values)
        for k, f in enumerate(freqs):
            if use_double_angle and prev is not None and f == 2.0 * prev[0]:
                # Geometric frequency ladder (e.g. 64 -> 128): derive with VPU muls
                # instead of extra EUP transcendentals (v7x compute-roofline lever).
                _, sp, cp = prev
                sk = 2.0 * sp * cp            # sin(2a) = 2 sin(a) cos(a)
                ck = cp * cp - sp * sp        # cos(2a) = cos^2(a) - sin^2(a)
            else:
                arg = x * f
                sk = jnp.sin(arg)
                ck = jnp.cos(arg)
            trig_ref[k] = sk.astype(trig_ref.dtype)
            trig_ref[nf + k] = ck.astype(trig_ref.dtype)
            prev = (f, sk, ck)

    @pl.when(s > 0)
    def _():
        # Remaining slabs: a single full-block, lane-dense, unmasked store of the
        # precomputed values (no partial-sublane vst anywhere).
        idx = jnp.maximum(s - 1, 0)
        o_ref[...] = trig_ref[idx].astype(o_ref.dtype)


def encode_fourier_pallas(x, freqs, *, out_dtype=None, use_double_angle=True,
                          vmem_budget_bytes=None):
    """x: (B, C, H, W).  Returns (B, C*(1+2*len(freqs)), H, W)."""
    b, c, h, w = x.shape
    assert h == w, "reference encode_fourier is only defined for square inputs"
    freqs = tuple(float(f) for f in freqs)
    nf = len(freqs)
    out_dtype = x.dtype if out_dtype is None else jnp.dtype(out_dtype)
    if nf == 0:
        return x.astype(out_dtype)

    n_slabs = 1 + 2 * nf
    chw = c * h * w
    chwp = _round_up(chw, 128)          # lane axis must be 128-divisible

    in_bytes = jnp.dtype(x.dtype).itemsize
    out_bytes = jnp.dtype(out_dtype).itemsize
    sub = max(_sublane_multiple(x.dtype), _sublane_multiple(out_dtype))

    capacity = _vmem_capacity_bytes()
    budget = (vmem_budget_bytes if vmem_budget_bytes is not None
              else min(capacity // 8, 16 << 20))

    # Bytes per sublane-padded block element: double-buffered input + double-buffered
    # output slab + the (2*nF)-slab trig scratch.
    per_elem = 2 * in_bytes + 2 * out_bytes + 2 * nf * out_bytes
    bt, ct = _choose_tiles(b, chwp, sub, per_elem, budget)
    n_j = chwp // ct
    grid = (b // bt, n_j, n_slabs)

    need = per_elem * _round_up(bt, sub) * ct
    vmem_limit = min(int(capacity * 0.6), max(need + (8 << 20), 32 << 20))

    # Collapse channels + spatial into the lane axis (free reshape of contiguous NCHW).
    x2 = x.reshape(b, chw)
    if chwp != chw:
        # Rare non-128-divisible sizes: zero-pad rather than emit masked partial stores.
        x2 = jnp.pad(x2, ((0, 0), (0, chwp - chw)))

    kernel = partial(_fourier_encode_kernel, freqs=freqs,
                     use_double_angle=use_double_angle)

    out = pl.pallas_call(
        kernel,
        out_shape=jax.ShapeDtypeStruct((b, n_slabs * chwp), out_dtype),
        grid=grid,
        # Input block index map ignores the slab axis -> x stays resident across slabs.
        in_specs=[pl.BlockSpec((bt, ct), lambda i, j, s: (i, j))],
        # Slab s of spatial tile j lives at flat block column s*n_j + j.
        out_specs=pl.BlockSpec((bt, ct), lambda i, j, s: (i, s * n_j + j)),
        scratch_shapes=[pltpu.VMEM((2 * nf, bt, ct), out_dtype)],
        compiler_params=pltpu.CompilerParams(
            dimension_semantics=("parallel", "parallel", "arbitrary"),
            vmem_limit_bytes=int(vmem_limit),
        ),
    )(x2)

    out = out.reshape(b, n_slabs, chwp)
    if chwp != chw:
        out = out[:, :, :chw]
    return out.reshape(b, n_slabs * c, h, w)


# ----------------------------------------------------------------------------
# Pure-JAX reference (mirrors the PyTorch ops 1:1, including the view quirk)
# ----------------------------------------------------------------------------
def encode_fourier_ref(x, freqs):
    bs, c, h, w = x.shape
    fr = jnp.asarray(freqs, jnp.float32)
    xt = x[:, None] * fr[None, :, None, None, None]      # (bs, nF, c, h, w)
    xt = xt.reshape(bs, -1, w, h)                          # pure reshape (h == w)
    return jnp.concatenate((x, jnp.sin(xt), jnp.cos(xt)), axis=1)


# ----------------------------------------------------------------------------
# Module wrapper
# ----------------------------------------------------------------------------
class FourierFeaturePredictorJAX:
    """JAX/Pallas port of FourierFeaturePredictor's forward preprocessing."""

    def __init__(self, freqs=(64, 128), num_class_embeds=10, in_channels=3,
                 use_double_angle=True):
        self.freqs = tuple(float(f) for f in freqs)
        self.n_freqs = len(self.freqs)
        self.in_channels = in_channels
        self.encoded_channels = in_channels * (1 + 2 * self.n_freqs)
        self.use_double_angle = use_double_angle
        # ClsCondUNetPredictor: uncond class id == original num_class_embeds
        # (the embedding table is extended to num_class_embeds + 1 in the UNet).
        self.uncond_cls = jnp.int32(num_class_embeds)

    def forward(self, x, t, cond=None, uncond_mask=None, out_dtype=None):
        # Fourier feature encoding — the hot path of this module (Pallas kernel).
        # Pass out_dtype=jnp.bfloat16 when the UNet consumer accepts it: halves the
        # 5x-inflated writeback on the HBM-bound v5e/v6e.
        enc = encode_fourier_pallas(x, self.freqs, out_dtype=out_dtype,
                                    use_double_angle=self.use_double_angle)

        # ClsCondUNetPredictor.forward class-label resolution (plain JAX glue).
        if cond is None:
            cond = jnp.full((x.shape[0],), self.uncond_cls, dtype=jnp.int32)
        elif uncond_mask is not None:
            cond = jnp.where(uncond_mask.astype(bool), self.uncond_cls,
                             cond.astype(jnp.int32))
        else:
            cond = cond.astype(jnp.int32)

        # TODO(synk): diffusers.UNet2DModel(enc, t, class_labels=cond).sample is an
        # external-library backbone with no clean Pallas equivalent; returning the
        # encoded features and resolved class labels.
        return enc, cond


# ----------------------------------------------------------------------------
if __name__ == "__main__":
    key = jax.random.PRNGKey(0)
    B, C, H, W = 2, 3, 16, 16
    kx, kt, kc = jax.random.split(key, 3)

    x = jax.random.normal(kx, (B, C, H, W), dtype=jnp.float32)
    t = jax.random.uniform(kt, (B,), dtype=jnp.float32) * 1000.0
    cond = jax.random.randint(kc, (B,), 0, 10, dtype=jnp.int32)
    uncond_mask = jnp.array([0.0, 1.0], dtype=jnp.float32)

    model = FourierFeaturePredictorJAX(freqs=(64, 128), num_class_embeds=10, in_channels=C)
    ref = encode_fourier_ref(x, model.freqs)

    # 1) Exact path (no double-angle): op-for-op identical math to the reference.
    enc_exact = jax.block_until_ready(
        encode_fourier_pallas(x, model.freqs, use_double_angle=False))
    assert enc_exact.shape == (B, C * (1 + 2 * model.n_freqs), H, W)
    assert enc_exact.dtype == jnp.float32
    assert jnp.allclose(enc_exact, ref, atol=1e-5, rtol=1e-5)

    # 2) Module forward (double-angle fast path — the v7x compute-roofline lever).
    #    sin(2a)=2 sin(a) cos(a) is mathematically exact; the looser tolerance only
    #    covers the difference between two f32 trig approximations at |arg| up to ~5e2.
    enc, labels = model.forward(x, t, cond=cond, uncond_mask=uncond_mask)
    enc = jax.block_until_ready(enc)
    labels = jax.block_until_ready(labels)
    assert enc.shape == ref.shape
    assert enc.dtype == jnp.float32
    assert jnp.allclose(enc, ref, atol=2e-3, rtol=1e-3)
    # uncond_mask==1 row must be remapped to the uncond class id (num_class_embeds).
    assert int(labels[0]) == int(cond[0])
    assert int(labels[1]) == 10

    print("KERNEL_OK")
</pallas_src>

<mosaic_0001>
module attributes {stable_mosaic.version = 11 : i64} {
  func.func @_fourier_encode_kernel(%arg0: i32, %arg1: i32, %arg2: i32, %arg3: memref<2x128xf32, #tpu.memory_space<vmem>>, %arg4: memref<2x128xf32, #tpu.memory_space<vmem>>, %arg5: memref<4x2x128xf32, #tpu.memory_space<vmem>>) attributes {dimension_semantics = [#tpu.dimension_semantics<parallel>, #tpu.dimension_semantics<parallel>, #tpu.dimension_semantics<arbitrary>], iteration_bounds = array<i64: 1, 6, 5>, scalar_prefetch = 0 : i64, scratch_operands = 1 : i64, tpu.core_type = #tpu.core_type<tc>, window_params = [{transform_indices = @transform_0, window_bounds = array<i64: 2, 128>}, {transform_indices = @transform_1, window_bounds = array<i64: 2, 128>}]} {
    %c0_i32 = arith.constant 0 : i32
    %0 = arith.cmpi eq, %arg2, %c0_i32 : i32
    %1 = arith.extui %0 : i1 to i32
    %c0_i32_0 = arith.constant 0 : i32
    %2 = arith.cmpi ne, %1, %c0_i32_0 : i32
    scf.if %2 {
      %c0 = arith.constant 0 : index
      %c0_3 = arith.constant 0 : index
      %6 = vector.load %arg3[%c0, %c0_3] : memref<2x128xf32, #tpu.memory_space<vmem>>, vector<2x128xf32>
      %c0_4 = arith.constant 0 : index
      %c0_5 = arith.constant 0 : index
      %7 = vector.load %arg4[%c0_4, %c0_5] : memref<2x128xf32, #tpu.memory_space<vmem>>, vector<2x128xf32>
      tpu.vector_store %arg4[%c0_4, %c0_5], %6 {strides = array<i32>} : memref<2x128xf32, #tpu.memory_space<vmem>>, vector<2x128xf32>,
      %cst = arith.constant 6.400000e+01 : f32
      %8 = vector.broadcast %cst : f32 to vector<2x128xf32>
      %9 = arith.mulf %6, %8 : vector<2x128xf32>
      %10 = math.sin %9 : vector<2x128xf32>
      %11 = math.cos %9 : vector<2x128xf32>
      %c0_6 = arith.constant 0 : index
      %c0_7 = arith.constant 0 : index
      %c0_8 = arith.constant 0 : index
      %12 = vector.load %arg5[%c0_6, %c0_7, %c0_8] : memref<4x2x128xf32, #tpu.memory_space<vmem>>, vector<1x2x128xf32>
      %13 = vector.shape_cast %12 : vector<1x2x128xf32> to vector<2x128xf32>
      %14 = vector.shape_cast %10 : vector<2x128xf32> to vector<1x2x128xf32>
      tpu.vector_store %arg5[%c0_6, %c0_7, %c0_8], %14 {strides = array<i32>} : memref<4x2x128xf32, #tpu.memory_space<vmem>>, vector<1x2x128xf32>,
      %c2 = arith.constant 2 : index
      %c0_9 = arith.constant 0 : index
      %c0_10 = arith.constant 0 : index
      %15 = vector.load %arg5[%c2, %c0_9, %c0_10] : memref<4x2x128xf32, #tpu.memory_space<vmem>>, vector<1x2x128xf32>
      %16 = vector.shape_cast %15 : vector<1x2x128xf32> to vector<2x128xf32>
      %17 = vector.shape_cast %11 : vector<2x128xf32> to vector<1x2x128xf32>
      tpu.vector_store %arg5[%c2, %c0_9, %c0_10], %17 {strides = array<i32>} : memref<4x2x128xf32, #tpu.memory_space<vmem>>, vector<1x2x128xf32>,
      %cst_11 = arith.constant 1.280000e+02 : f32
      %18 = vector.broadcast %cst_11 : f32 to vector<2x128xf32>
      %19 = arith.mulf %6, %18 : vector<2x128xf32>
      %20 = math.sin %19 : vector<2x128xf32>
      %21 = math.cos %19 : vector<2x128xf32>
      %c1 = arith.constant 1 : index
      %c0_12 = arith.constant 0 : index
      %c0_13 = arith.constant 0 : index
      %22 = vector.load %arg5[%c1, %c0_12, %c0_13] : memref<4x2x128xf32, #tpu.memory_space<vmem>>, vector<1x2x128xf32>
      %23 = vector.shape_cast %22 : vector<1x2x128xf32> to vector<2x128xf32>
      %24 = vector.shape_cast %20 : vector<2x128xf32> to vector<1x2x128xf32>
      tpu.vector_store %arg5[%c1, %c0_12, %c0_13], %24 {strides = array<i32>} : memref<4x2x128xf32, #tpu.memory_space<vmem>>, vector<1x2x128xf32>,
      %c3 = arith.constant 3 : index
      %c0_14 = arith.constant 0 : index
      %c0_15 = arith.constant 0 : index
      %25 = vector.load %arg5[%c3, %c0_14, %c0_15] : memref<4x2x128xf32, #tpu.memory_space<vmem>>, vector<1x2x128xf32>
      %26 = vector.shape_cast %25 : vector<1x2x128xf32> to vector<2x128xf32>
      %27 = vector.shape_cast %21 : vector<2x128xf32> to vector<1x2x128xf32>
      tpu.vector_store %arg5[%c3, %c0_14, %c0_15], %27 {strides = array<i32>} : memref<4x2x128xf32, #tpu.memory_space<vmem>>, vector<1x2x128xf32>,
    } else {
    }
    %c0_i32_1 = arith.constant 0 : i32
    %3 = arith.cmpi sgt, %arg2, %c0_i32_1 : i32
    %4 = arith.extui %3 : i1 to i32
    %c0_i32_2 = arith.constant 0 : i32
    %5 = arith.cmpi ne, %4, %c0_i32_2 : i32
    scf.if %5 {
      %c1_i32 = arith.constant 1 : i32
      %6 = arith.subi %arg2, %c1_i32 : i32
      %c0_i32_3 = arith.constant 0 : i32
      %7 = arith.maxsi %6, %c0_i32_3 : i32
      %8 = arith.index_cast %7 : i32 to index
      %c0 = arith.constant 0 : index
      %c0_4 = arith.constant 0 : index
      %9 = vector.load %arg5[%8, %c0, %c0_4] : memref<4x2x128xf32, #tpu.memory_space<vmem>>, vector<1x2x128xf32>
      %10 = vector.shape_cast %9 : vector<1x2x128xf32> to vector<2x128xf32>
      %c0_5 = arith.constant 0 : index
      %c0_6 = arith.constant 0 : index
      %11 = vector.load %arg4[%c0_5, %c0_6] : memref<2x128xf32, #tpu.memory_space<vmem>>, vector<2x128xf32>
      tpu.vector_store %arg4[%c0_5, %c0_6], %10 {strides = array<i32>} : memref<2x128xf32, #tpu.memory_space<vmem>>, vector<2x128xf32>,
    } else {
    }
    return
  }
  func.func @transform_0(%arg0: i32, %arg1: i32, %arg2: i32) -> (i32, i32) {
    %c0_i32 = arith.constant 0 : i32
    return %arg0, %arg1 : i32, i32
  }
  func.func @transform_1(%arg0: i32, %arg1: i32, %arg2: i32) -> (i32, i32) {
    %c6_i32 = arith.constant 6 : i32
    %0 = arith.muli %arg2, %c6_i32 : i32
    %1 = arith.addi %0, %arg1 : i32
    %c0_i32 = arith.constant 0 : i32
    return %arg0, %1 : i32, i32
  }
}

</mosaic_0001>

<bundles_post_ra>
// kernel: tpu_custom_call.1
= control target key start
LH: loop header
LB: loop body
LE: loop exit
PB: predicated region body
PF: predicated region fallthrough
CT: control target
= control target key end

     0   :  { %6 = vsyncpa [#allocation4], 0  ;;  %s1342_s0 = inlined_call_operand.hbm [shape: f32[2,768], index: 0, kind: input, shape index: {}]   ;;  %s1343_s1 = inlined_call_operand.hbm [shape: f32[2,3840], index: 1, kind: output, shape index: {}]  }
   0x1   :  { %8 = vsyncpa [#allocation4 + $0x1], 0 }
   0x2   :  { %9 = vsyncpa [#allocation5], 0 }
   0x3   :  { %11 = vsyncpa [#allocation5 + $0x1], 0  ;;  %s1042_s6 = smov 0   ;;  %s1044_s7 = smov 0  }
   0x4   :  { %s1046_s8 = smov 0   ;;  %s1048_s9 = smov 0  }
   0x5   :  { %s1050_s10 = smov 0   ;;  %s1052_s11 = smov 0  }
   0x6   :  { %s1054_s12 = smov 0   ;;  %s1056_s13 = smov 0  }
   0x7   :  { %s1058_s14 = smov 0   ;;  %s1060_s15 = smov 0  }
   0x8   :  { %s1062_s16 = smov 0  }
   0x9 LB: > { %s713_s17 = sadd.s32 4294967295, %s1022_s16   ;;  %s714_s18 = sadd.s32 4294967294, %s1022_s16   ;;  %s1022_s16 = sphi %s1062_s16, %s17_s16   ;;  %s1018_s15 = sphi %s1060_s15, %s1363_s15   ;;  %s1014_s14 = sphi %s1058_s14, %s1362_s14   ;;  %s1010_s13 = sphi %s1056_s13, %s1361_s13   ;;  %s1006_s12 = sphi %s1054_s12, %s1360_s12   ;;  %s1002_s11 = sphi %s1052_s11, %s1359_s11   ;;  %s998_s10 = sphi %s1050_s10, %s1358_s10   ;;  %s994_s9 = sphi %s1048_s9, %s1357_s9   ;;  %s990_s8 = sphi %s1046_s8, %s1356_s8   ;;  %s986_s7 = sphi %s1044_s7, %s1355_s7   ;;  %s982_s6 = sphi %s1042_s6, %s1354_s6  }
   0xa   : > { %s29_s19 = sadd.s32 1, %s1014_s14  ;;  %s32_s20 = sadd.s32 1, %s1018_s15 }
   0xb   : > { %p30_p0 = scmp.ge.s32.totalorder %s29_s19, 5  ;;  %s45_s21 = sadd.s32 1, %s1002_s11 }
   0xc   : > { %p52_p1 = scmp.ne.s32.totalorder %s1002_s11, %s998_s10  ;;  %p53_p2 = scmp.eq.s32.totalorder %s1022_s16, 0 }
   0xd   : > { %s1365_s19 = smov (%p30_p0, %s29_s19), 0  ;;  %s1367_s20 = smov (!%p30_p0, %s32_s20), %s1018_s15 }
   0xe   : > { %p1106_p3 = por %p53_p2, %p52_p1  ;;  %p58_p4 = scmp.ne.s32.totalorder %s998_s10, %s994_s9 }
   0xf   : > { %p34_p5 = scmp.ge.s32.totalorder %s1367_s20, 6  ;;  %p59_p6 = scmp.eq.s32.totalorder %s713_s17, 0 }
  0x10   : > { %s68_s23 = smul.u32 6, %s1014_s14  ;;  %s77_s24 = sadd.s32 1, %s990_s8 }
  0x11   : > { %s1369_s20 = smov (%p34_p5, %s1367_s20), 0  ;;  %p1115_p7 = por %p59_p6, %p58_p4 }
  0x12   : > { %s69_s26 = sadd.s32 %s1018_s15, %s68_s23  ;;  %s41_s27 = ssub.s32 %s1018_s15, %s1369_s20 }
  0x13   : > { %s70_s28 = smul.u32 6, %s1365_s19  ;;  %p43_p8 = scmp.eq.s32.totalorder %s41_s27, 0 }
  0x14   : > { %p87_p9 = scmp.ne.s32.totalorder %s990_s8, %s986_s7  ;;  %p88_p10 = scmp.eq.s32.totalorder %s713_s17, 29 }
  0x15   : > { %s71_s29 = sadd.s32 %s70_s28, %s1369_s20  ;;  %p93_p13 = scmp.ne.s32.totalorder %s986_s7, %s982_s6 }
  0x16   : > { %s1127_s30 = scalar_select %p43_p8, %s1002_s11, %s45_s21  }
  0x17   : > { %s73_s2 = ssub.s32 %s69_s26, %s71_s29  ;;  %p1129_p11 = por %p88_p10, %p87_p9 }
  0x18   : > { %p75_p12 = scmp.eq.s32.totalorder %s73_s2, 0  ;;  %p94_p0 = scmp.eq.s32.totalorder %s714_s18, 29 }
  0x19   : > { %s1347_s3 = scalar_select %p1129_p11, 1, 0 }
  0x1a   : > { %s1138_s4 = scalar_select %p75_p12, %s990_s8, %s77_s24  }
  0x1b   : > { %p1140_p1 = por %p94_p0, %p93_p13  ;;  %p766_p2 = scmp.lt.s32.totalorder %s1022_s16, 30 }
  0x1c   : > { %s114_s9 = sand.u32 1, %s1002_s11   ;;  %s718_s17 = sshll.u32 %s1018_s15, 5 }
  0x1d   : > { %s1348_s5 = scalar_select %p1140_p1, 1, 0 }
  0x1e   : > { %s717_s21 = sshll.u32 %s114_s9, 1  ;;  %s1150_s27 = scalar_lea.hbm %s1342_s0, %s718_s17 }
  0x1f   : > { %s118_s28 = scalar_lea.vmem [#allocation3], %s717_s21  ;;  %p1154_p4 = pnand %p766_p2, %p1106_p3 }
  0x20   : > { %s127_s18 = sshll.u32 %s118_s28, 4  ;;  %s115_s29 = scalar_lea.sflag [#allocation4], %s114_s9  ;;  %s1158_s18 = int_to_ptr.vmem [resolvable:$true] %s127_s18 }
  0x21   : > { %s870_s2 = scalar_lea.hbm %s1150_s27, 32  ;;  %p872_p9 = pneg %p1154_p4 }
  0x22   : > { %p871_p8 = scmp.ne.s32.totalorder %s1150_s27, %s870_s2  ;;  %s875_s21 = scalar_lea.hbm %s1342_s0, 192 }
  0x23   : > { %p876_p3 = scmp.lt.u32.totalorder %s1150_s27, %s1342_s0  ;;  %p877_p13 = scmp.lt.u32.totalorder %s875_s21, %s870_s2 }
  0x24   : > { %p873_p10 = pnand %p872_p9, %p871_p8  ;;  %p879_p2 = scmp.lt.u32.totalorder %s870_s2, %s1150_s27 }
  0x25   : > { %p878_p0 = por %p877_p13, %p876_p3 }
  0x26   : > { %p874_p12 = pneg %p873_p10 }
  0x27   : > { %p880_p5 = por %p879_p2, %p878_p0 }
  0x29   : > { %p881_p6 = pnand %p880_p5, %p874_p12 }
  0x2b   : > { %884 = shalt.err (!%p881_p6)
}
  0x2c   : > { %s885_s9 = scalar_lea.vmem %s1158_s18, 32  ;;  %s1024_s28 = smov [#allocation3]  }
  0x2d   : > { %p886_p8 = scmp.ne.s32.totalorder %s1158_s18, %s885_s9  ;;  %s890_s22 = sshll.u32 %s1024_s28, 4  ;;  %s891_s22 = int_to_ptr.vmem [resolvable:$false] %s890_s22 }
  0x2e   : > { %s892_s17 = scalar_lea.vmem %s891_s22, 64  ;;  %p893_p11 = scmp.lt.s32.totalorder %s1158_s18, %s891_s22 }
  0x2f   : > { %p888_p10 = pnand %p886_p8, %p872_p9  ;;  %p894_p3 = scmp.lt.s32.totalorder %s892_s17, %s885_s9 }
  0x31   : > { %p889_p1 = pneg %p888_p10  ;;  %p895_p13 = por %p894_p3, %p893_p11 }
  0x33   : > { %p896_p0 = pnand %p895_p13, %p889_p1 }
  0x35   : > { %899 = shalt.err (!%p896_p0)
}
  0x36   : > { %761 = dma.hbm_to_vmem [thread:$0]  (!%p1154_p4), %s1150_s27, 32, %s1158_s18, %s115_s29  }
  0x37   : > { %p1350_p5 = scmp.lt.s32.totalorder %s1022_s16, 31  ;;  %p1351_p6 = scmp.ge.s32.totalorder %s1022_s16, 1 }
  0x39   : > { %p133_p9 = pnand %p1351_p6, %p1350_p5 }
  0x3a   : > { %s138_s2 = sand.u32 (!%p133_p9), 1, %s998_s10  }
  0x3b   : > { %136 = sbr.rel (%p133_p9) target bundleno = 201 (0xc9), region = 24  ;;  %s720_s21 = sshll.u32 (!%p133_p9), %s138_s2, 1 }
  0x3c   : > { %s139_s23 = scalar_lea.sflag (!%p133_p9), [#allocation4], %s138_s2  ;;  %s142_s26 = scalar_lea.vmem (!%p133_p9), [#allocation3], %s720_s21 }
  0x42   : > { %973 = dma.done.wait (%p1115_p7), %s139_s23, 32  }
  0x43   : > { %975 = vsyncadd (%p1115_p7), %s139_s23, 4294967264  ;;  %s158_s24 = sand.u32 1, %s986_s7   ;;  %p722_p11 = scmp.ne.s32.totalorder %s1006_s12, 0 }
  0x44   : > { %s721_s27 = sshll.u32 %s158_s24, 1  ;;  %v167_v0 = vld [vmem:[%s142_s26] sm:$0x3] (!%p722_p11)  ;;  %v1025_v26 = vmov (!%p722_p11), 683565275  }
  0x45   : > { %s1199_s18 = scalar_lea.vmem [#allocation6], %s721_s27  ;;  %166 = sbr.rel (%p722_p11) target bundleno = 161 (0xa1), region = 32  ;;  %v1203_v1 = vmul.f32 (!%p722_p11), 64.0, %v167_v0  ;;  %v1205_v2 = vmul.f32 (!%p722_p11), 128.0, %v167_v0  ;;  %v1026_v28 = vmov (!%p722_p11), 2475754826  }
  0x46   : > { %168 = vst [vmem:[%s1199_s18] sm:$0x3] (!%p722_p11), %v167_v0  ;;  %v1027_v31 = vmov (!%p722_p11), 2131351028   ;;  %v1028_v33 = vmov (!%p722_p11), 2102212464  }
  0x47   : > { %v173_v3 = vand.u32 (!%p722_p11), 2139095040, %v1203_v1  ;;  %v384_v4 = vand.u32 (!%p722_p11), 2139095040, %v1205_v2  ;;  %v170_v5 = vand.u32 (!%p722_p11), 2147483647, %v1203_v1  ;;  %v381_v6 = vand.u32 (!%p722_p11), 2147483647, %v1205_v2 }
  0x48   : > { %v1029_v35 = vmov (!%p722_p11), 920167782   ;;  %v1030_v42 = vmov (!%p722_p11), 1326507024   ;;  %vm172_vm14 = vcmp.lt.s32.totalorder (!%p722_p11), %v1203_v1, 0 }
  0x49   : > { %v174_v7 = vshrl.u32 (!%p722_p11), %v173_v3, 23  ;;  %v385_v8 = vshrl.u32 (!%p722_p11), %v384_v4, 23  ;;  %v177_v9 = vand.u32 (!%p722_p11), 8388607, %v170_v5  ;;  %v388_v10 = vand.u32 (!%p722_p11), 8388607, %v381_v6 }
  0x4a   : > { %vm171_vm15 = vcmp.le.f32.partialorder (!%p722_p11), %v170_v5, 0.7853982 }
  0x4b   : > { %v723_v11 = vadd.s32 (!%p722_p11), 4294967169, %v174_v7  ;;  %v731_v12 = vadd.s32 (!%p722_p11), 4294967169, %v385_v8  ;;  %v178_v15 = vor.u32 (!%p722_p11), 8388608, %v177_v9  ;;  %v389_v16 = vor.u32 (!%p722_p11), 8388608, %v388_v10 }
  0x4d   : > { %v180_v13 = vadd.s32 1, %v723_v11  ;;  %v391_v14 = vadd.s32 1, %v731_v12  ;;  %v1215_v22 = vshll.u32 %v178_v15, 8  ;;  %v1217_v23 = vshll.u32 %v389_v16, 8 }
  0x4f   : > { %vm181_vm0 = vcmp.gt.s32.totalorder %v180_v13, 0  ;;  %vm392_vm1 = vcmp.gt.s32.totalorder %v391_v14, 0 }
  0x50   : > { %v182_v17 = vsel %vm181_vm0, %v180_v13, 0  ;;  %v393_v18 = vsel %vm392_vm1, %v391_v14, 0  ;;  %vm383_vm0 = vcmp.lt.s32.totalorder %v1205_v2, 0  ;;  %vm382_vm1 = vcmp.le.f32.partialorder %v381_v6, 0.7853982 }
  0x51   : > { %v184_v19 = vand.u32 31, %v182_v17  ;;  %v395_v20 = vand.u32 31, %v393_v18  ;;  %v183_v21 = vshrl.u32 %v182_v17, 5  ;;  %v1219_v25 = vshrl.u32 %v393_v18, 5 }
  0x53   : > { %v185_v24 = vsub.s32 32, %v184_v19  ;;  %v187_v27 = vshll.u32 %v1025_v26, %v184_v19  ;;  %v190_v29 = vshll.u32 %v1026_v28, %v184_v19  ;;  %v396_v30 = vsub.s32 32, %v395_v20 }
  0x54   : > { %v193_v32 = vshll.u32 %v1027_v31, %v184_v19  ;;  %v196_v34 = vshll.u32 %v1028_v33, %v184_v19  ;;  %v199_v36 = vshll.u32 %v1029_v35, %v184_v19  ;;  %vm202_vm2 = vcmp.lt.s32.totalorder %v183_v21, 1 }
  0x55   : > { %v186_v37 = vshrl.u32 %v1025_v26, %v185_v24  ;;  %v188_v38 = vshrl.u32 %v1026_v28, %v185_v24  ;;  %v191_v39 = vshrl.u32 %v1027_v31, %v185_v24  ;;  %v194_v40 = vshrl.u32 %v1028_v33, %v185_v24 }
  0x56   : > { %v197_v41 = vshrl.u32 %v1029_v35, %v185_v24  ;;  %v200_v43 = vshrl.u32 %v1030_v42, %v185_v24  ;;  %vm203_vm3 = vcmp.lt.s32.totalorder %v183_v21, 2  ;;  %vm205_vm4 = vcmp.lt.s32.totalorder %v183_v21, 4 }
  0x57   : > { %v189_v44 = vor.u32 %v188_v38, %v187_v27  ;;  %v192_v45 = vor.u32 %v191_v39, %v190_v29  ;;  %v195_v46 = vor.u32 %v194_v40, %v193_v32  ;;  %vm204_vm5 = vcmp.lt.s32.totalorder %v183_v21, 3 }
  0x58   : > { %v198_v47 = vor.u32 %v197_v41, %v196_v34  ;;  %v201_v48 = vor.u32 %v200_v43, %v199_v36  ;;  %v398_v49 = vshll.u32 %v1025_v26, %v395_v20  ;;  %v399_v57 = vshrl.u32 %v1026_v28, %v396_v30 }
  0x59   : > { %v206_v50 = vsel %vm202_vm2, %v186_v37, %v189_v44  ;;  %v207_v51 = vsel %vm205_vm4, %v195_v46, 2102212464  ;;  %v210_v52 = vsel %vm202_vm2, %v189_v44, %v192_v45  ;;  %v214_v53 = vsel %vm202_vm2, %v192_v45, %v195_v46 }
  0x5a   : > { %v208_v54 = vsel %vm204_vm5, %v192_v45, %v207_v51  ;;  %v211_v55 = vsel %vm205_vm4, %v198_v47, 920167782  ;;  %v215_v56 = vsel %vm205_vm4, %v201_v48, 1326507024  ;;  %v397_v61 = vshrl.u32 %v1025_v26, %v396_v30 }
  0x5b   : > { %v209_v58 = vsel %vm203_vm3, %v206_v50, %v208_v54  ;;  %v212_v59 = vsel %vm204_vm5, %v195_v46, %v211_v55  ;;  %v216_v60 = vsel %vm204_vm5, %v198_v47, %v215_v56  ;;  %v400_v0 = vor.u32 %v399_v57, %v398_v49 }
  0x5c   : > { %v213_v62 = vsel %vm203_vm3, %v210_v52, %v212_v59  ;;  %v217_v63 = vsel %vm203_vm3, %v214_v53, %v216_v60  ;;  %v401_v3 = vshll.u32 %v1026_v28, %v395_v20  ;;  %v402_v10 = vshrl.u32 %v1027_v31, %v396_v30 }
  0x5d   : > { %v1225_v4 = vmul.u32.u64.low %v1215_v22, %v217_v63  ;;  %v1226_v7 = vmul.u32.u64.high %v1215_v22, %v217_v63, %v1225_v4  ;;  %v1229_v8 = vmul.u32.u64.low %v1215_v22, %v213_v62  ;;  %v1230_v9 = vmul.u32.u64.high %v1215_v22, %v213_v62, %v1229_v8 }
  0x5e   : > { %v404_v11 = vshll.u32 %v1027_v31, %v395_v20  ;;  %v405_v12 = vshrl.u32 %v1028_v33, %v396_v30  ;;  %v407_v13 = vshll.u32 %v1028_v33, %v395_v20  ;;  %v408_v14 = vshrl.u32 %v1029_v35, %v396_v30 }
  0x5f   : > { %v410_v15 = vshll.u32 %v1029_v35, %v395_v20  ;;  %v411_v16 = vshrl.u32 %v1030_v42, %v396_v30  ;;  %vm413_vm6 = vcmp.lt.s32.totalorder %v1219_v25, 1  ;;  %v225_v17 = vmul.u32 %v1215_v22, %v209_v58 }
  0x60   : > { %v403_v18 = vor.u32 %v402_v10, %v401_v3  ;;  %v406_v19 = vor.u32 %v405_v12, %v404_v11  ;;  %vm414_vm7 = vcmp.lt.s32.totalorder %v1219_v25, 2  ;;  %vm227_vm8 = vc.u32 %v1226_v7, %v1229_v8 }
  0x61   : > { %v228_v21 = vadd.s32 1, %v1230_v9  ;;  %v409_v24 = vor.u32 %v408_v14, %v407_v13  ;;  %vm415_vm9 = vcmp.lt.s32.totalorder %v1219_v25, 3  ;;  %v412_v26 = vor.u32 %v411_v16, %v410_v15 }
  0x62   : > { %vm416_vm10 = vcmp.lt.s32.totalorder %v1219_v25, 4  ;;  %v417_v20 = vsel %vm413_vm6, %v397_v61, %v400_v0  ;;  %v421_v22 = vsel %vm413_vm6, %v400_v0, %v403_v18  ;;  %v425_v30 = vsel %vm413_vm6, %v403_v18, %v406_v19 }
  0x63   : > { %v229_v27 = vsel %vm227_vm8, %v228_v21, %v1230_v9  ;;  %v418_v28 = vsel %vm416_vm10, %v406_v19, 2102212464  ;;  %v422_v29 = vsel %vm416_vm10, %v409_v24, 920167782  ;;  %v426_v34 = vsel %vm416_vm10, %v412_v26, 1326507024 }
  0x64   : > { %v230_v31 = vadd.s32 %v229_v27, %v225_v17  ;;  %v419_v32 = vsel %vm415_vm9, %v403_v18, %v418_v28  ;;  %v423_v33 = vsel %vm415_vm9, %v406_v19, %v422_v29  ;;  %v427_v37 = vsel %vm415_vm9, %v409_v24, %v426_v34 }
  0x65   : > { %v420_v35 = vsel %vm414_vm7, %v417_v20, %v419_v32  ;;  %v424_v36 = vsel %vm414_vm7, %v421_v22, %v423_v33  ;;  %v428_v39 = vsel %vm414_vm7, %v425_v30, %v427_v37  ;;  %v226_v58 = vadd.s32 %v1229_v8, %v1226_v7 }
  0x66   : > { %v231_v38 = vadd.s32 536870912, %v230_v31  ;;  %v1253_v40 = vmul.u32.u64.low %v1217_v23, %v424_v36  ;;  %v1254_v41 = vmul.u32.u64.high %v1217_v23, %v424_v36, %v1253_v40  ;;  %v436_v45 = vmul.u32 %v1217_v23, %v420_v35 }
  0x67   : > { %v1257_v42 = vmul.u32.u64.low %v1217_v23, %v428_v39  ;;  %v1258_v43 = vmul.u32.u64.high %v1217_v23, %v428_v39, %v1257_v42  ;;  %vm262_vm8 = vweird.f32 %v1203_v1 }
  0x68   : > { %v232_v44 = vshrl.u32 %v231_v38, 30  ;;  %v439_v47 = vadd.s32 1, %v1254_v41 }
  0x69   : > { %vm438_vm11 = vc.u32 %v1258_v43, %v1253_v40  ;;  %v437_v14 = vadd.s32 %v1253_v40, %v1258_v43 }
  0x6a   : > { %v233_v46 = vshll.u32 %v232_v44, 30  ;;  %v440_v25 = vsel %vm438_vm11, %v439_v47, %v1254_v41  ;;  %v256_v7 = vsub.s32 4, %v232_v44 }
  0x6b   : > { %v441_v49 = vadd.s32 %v440_v25, %v436_v45 }
  0x6c   : > { %v234_v48 = vsub.s32 %v230_v31, %v233_v46  ;;  %v257_v20 = vsel %vm172_vm14, %v256_v7, %v232_v44 }
  0x6d   : > { %v442_v51 = vadd.s32 536870912, %v441_v49  ;;  %v259_v30 = vsel %vm171_vm15, 0, %v257_v20 }
  0x6e   : > { %v236_v50 = vsub.s32 0, %v234_v48  ;;  %v263_v35 = vadd.s32 3, %v259_v30  ;;  %v367_v39 = vand.u32 3, %v259_v30 }
  0x6f   : > { %v443_v53 = vshrl.u32 %v442_v51, 30 }
  0x70   : > { %v724_v52 = vmin.u32 %v236_v50, %v234_v48  ;;  %v264_v38 = vand.u32 3, %v263_v35  ;;  %vm372_vm3 = vcmp.eq.s32.totalorder %v367_v39, 2  ;;  %vm369_vm5 = vcmp.eq.s32.totalorder %v367_v39, 0 }
  0x71   : > { %v444_v55 = vshll.u32 %v443_v53, 30  ;;  %v467_v34 = vsub.s32 4, %v443_v53  ;;  %vm368_vm7 = vcmp.lt.s32.totalorder %v367_v39, 2 }
  0x72   : > { %v238_v54 = vclz %v724_v52  ;;  %vm269_vm2 = vcmp.eq.s32.totalorder %v264_v38, 2  ;;  %vm266_vm4 = vcmp.eq.s32.totalorder %v264_v38, 0  ;;  %vm265_vm6 = vcmp.lt.s32.totalorder %v264_v38, 2 }
  0x73   : > { %v445_v57 = vsub.s32 %v441_v49, %v444_v55  ;;  %v468_v37 = vsel %vm383_vm0, %v467_v34, %v443_v53 }
  0x74   : > { %v725_v56 = vadd.s32 4294967294, %v238_v54  ;;  %v470_v42 = vsel %vm382_vm1, 0, %v468_v37 }
  0x75   : > { %v447_v59 = vsub.s32 0, %v445_v57  ;;  %v474_v46 = vadd.s32 3, %v470_v42  ;;  %v578_v53 = vand.u32 3, %v470_v42 }
  0x76   : > { %vm726_vm12 = vcmp.lt.s32.totalorder %v725_v56, 0 }
  0x77   : > { %v241_v23 = vsel %vm726_vm12, 0, %v725_v56  ;;  %v732_v63 = vmin.u32 %v447_v59, %v445_v57  ;;  %v475_v52 = vand.u32 3, %v474_v46  ;;  %vm583_vm10 = vcmp.eq.s32.totalorder %v578_v53, 2 }
  0x78   : > { %v242_v60 = vsub.s32 32, %v241_v23  ;;  %v243_v61 = vshll.u32 %v234_v48, %v241_v23  ;;  %v246_v62 = vsub.s32 4294967266, %v241_v23  ;;  %vm580_vm12 = vcmp.eq.s32.totalorder %v578_v53, 0 }
  0x79   : > { %v449_v4 = vclz %v732_v63  ;;  %vm480_vm9 = vcmp.eq.s32.totalorder %v475_v52, 2  ;;  %vm477_vm11 = vcmp.eq.s32.totalorder %v475_v52, 0 }
  0x7a   : > { %v244_v0 = vshrl.u32 %v226_v58, %v242_v60  ;;  %v247_v3 = vadd.s32 127, %v246_v62 }
  0x7b   : > { %v733_v11 = vadd.s32 4294967294, %v449_v4 }
  0x7c   : > { %v245_v9 = vor.u32 %v244_v0, %v243_v61  ;;  %v248_v10 = vshll.u32 %v247_v3, 23 }
  0x7d   : > { %vm734_vm13 = vcmp.lt.s32.totalorder %v733_v11, 0 }
  0x7e   : > { %v249_v12 = vor.u32 4788187, %v248_v10  ;;  %v252_v13 = vcvt.s32.f32 %v245_v9  ;;  %v452_v8 = vsel %vm734_vm13, 0, %v733_v11  ;;  %vm476_vm13 = vcmp.lt.s32.totalorder %v475_v52, 2 }
  0x7f   : > { %v453_v16 = vsub.s32 32, %v452_v8  ;;  %v454_v17 = vshll.u32 %v445_v57, %v452_v8  ;;  %v457_v18 = vsub.s32 4294967266, %v452_v8 }
  0x80   : > { %v250_v15 = vand.u32 2147483647, %v249_v12 }
  0x81   : > { %v455_v21 = vshrl.u32 %v437_v14, %v453_v16  ;;  %v458_v24 = vadd.s32 127, %v457_v18 }
  0x82   : > { %v253_v19 = vmul.f32 %v252_v13, %v250_v15 }
  0x83   : > { %v456_v22 = vor.u32 %v455_v21, %v454_v17  ;;  %v459_v27 = vshll.u32 %v458_v24, 23 }
  0x84   : > { %v254_v26 = vxor.u32 2147483648, %v253_v19 }
  0x85   : > { %v460_v31 = vor.u32 4788187, %v459_v27  ;;  %v463_v32 = vcvt.s32.f32 %v456_v22 }
  0x86   : > { %v255_v28 = vsel %vm172_vm14, %v254_v26, %v253_v19  ;;  %vm579_vm14 = vcmp.lt.s32.totalorder %v578_v53, 2 }
  0x87   : > { %v258_v29 = vsel %vm171_vm15, %v1203_v1, %v255_v28  ;;  %v461_v33 = vand.u32 2147483647, %v460_v31  ;;  %vm473_vm15 = vweird.f32 %v1205_v2 }
  0x88   : > { %862 = vcosq.f32 %v258_v29 }
  0x89   : > { %864 = vsinq.f32 %v258_v29  ;;  %v464_v36 = vmul.f32 %v463_v32, %v461_v33 }
  0x8b   : > { %v465_v5 = vxor.u32 2147483648, %v464_v36 }
  0x8d   : > { %v466_v40 = vsel %vm383_vm0, %v465_v5, %v464_v36 }
  0x8e   : > { %v469_v41 = vsel %vm382_vm1, %v1205_v2, %v466_v40 }
  0x8f   : > { %866 = vcosq.f32 %v469_v41 }
  0x90   : > { %868 = vsinq.f32 %v469_v41 }
  0x92   : > { %v863_v43 = vpop.eup %862 }
  0x93   : > { %v865_v44 = vpop.eup %864  ;;  %v270_v45 = vxor.u32 2147483648, %v863_v43 }
  0x94   : > { %v267_v6 = vxor.u32 2147483648, %v865_v44 }
  0x95   : > { %v271_v47 = vsel %vm269_vm2, %v270_v45, %v865_v44  ;;  %v374_v48 = vsel %vm372_vm3, %v270_v45, %v865_v44 }
  0x96   : > { %v268_v25 = vsel %vm266_vm4, %v863_v43, %v267_v6  ;;  %v371_v49 = vsel %vm369_vm5, %v863_v43, %v267_v6 }
  0x97   : > { %v272_v50 = vsel %vm265_vm6, %v268_v25, %v271_v47  ;;  %v375_v51 = vsel %vm368_vm7, %v371_v49, %v374_v48 }
  0x98   : > { %v273_v54 = vsel %vm262_vm8, nan, %v272_v50  ;;  %v376_v55 = vsel %vm262_vm8, nan, %v375_v51 }
  0x99   : > { %377 = vst [vmem:[#allocation2] sm:$0x3] %v273_v54  ;;  %379 = vst [vmem:[#allocation2 + $0x4] sm:$0x3] %v376_v55  ;;  %v867_v56 = vpop.eup %866 }
  0x9a   : > { %v869_v57 = vpop.eup %868  ;;  %v481_v58 = vxor.u32 2147483648, %v867_v56 }
  0x9b   : > { %v478_v1 = vxor.u32 2147483648, %v869_v57 }
  0x9c   : > { %v482_v23 = vsel %vm480_vm9, %v481_v58, %v869_v57  ;;  %v585_v59 = vsel %vm583_vm10, %v481_v58, %v869_v57 }
  0x9d   : > { %v479_v60 = vsel %vm477_vm11, %v867_v56, %v478_v1  ;;  %v582_v61 = vsel %vm580_vm12, %v867_v56, %v478_v1 }
  0x9e   : > { %v483_v62 = vsel %vm476_vm13, %v479_v60, %v482_v23  ;;  %v586_v63 = vsel %vm579_vm14, %v582_v61, %v585_v59 }
  0x9f   : > { %v484_v0 = vsel %vm473_vm15, nan, %v483_v62  ;;  %v587_v3 = vsel %vm473_vm15, nan, %v586_v63 }
  0xa0   : > { %589 = vst [vmem:[#allocation2 + $0x2] sm:$0x3] %v484_v0  ;;  %591 = vst [vmem:[#allocation2 + $0x6] sm:$0x3] %v587_v3 }
  0xa1 PF: > { %p739_p7 = scmp.le.s32.totalorder %s1006_s12, 0 }
  0xa2   : > { %s740_s25 = sadd.s32 (!%p739_p7), 4294967295, %s1006_s12 }
  0xa3   : > { %595 = sbr.rel (%p739_p7) target bundleno = 175 (0xaf), region = 36  ;;  %p597_p1 = scmp.gt.s32.totalorder (!%p739_p7), %s740_s25, 0 }
  0xaa   : > { %s1371_s25 = smov (!%p597_p1, %s740_s25), 0 }
  0xab   : > { %s741_s29 = sshll.u32 %s1371_s25, 1 }
  0xac   : > { %s600_s9 = scalar_lea.vmem [#allocation2], %s741_s29 }
  0xad   : > { %v601_v2 = vld [vmem:[%s600_s9] sm:$0x3] }
  0xae   : > { %602 = vst [vmem:[%s1199_s18] sm:$0x3] %v601_v2 }
  0xaf PF: > { %s611_s28 = smul.u32 6, %s1006_s12  ;;  %s621_s22 = sshll.u32 %s1199_s18, 4  ;;  %s1282_s22 = int_to_ptr.vmem [resolvable:$true] %s621_s22 }
  0xb0   : > { %s604_s27 = scalar_lea.sflag [#allocation5], %s158_s24  ;;  %s900_s25 = scalar_lea.vmem %s1282_s22, 32 }
  0xb1   : > { %s612_s17 = sadd.s32 %s1010_s13, %s611_s28  ;;  %p901_p4 = scmp.ne.s32.totalorder %s1282_s22, %s900_s25 }
  0xb2   : > { %s743_s2 = sshll.u32 %s612_s17, 5  ;;  %p1352_p12 = scmp.ne.s32.totalorder %s1347_s3, 0 }
  0xb3   : > { %s619_s26 = scalar_lea.hbm %s1343_s1, %s743_s2  ;;  %s1031_s12 = smov [#allocation6]  }
  0xb4   : > { %p902_p2 = pnand %p901_p4, %p1352_p12  ;;  %s904_s18 = sshll.u32 %s1031_s12, 4  ;;  %s905_s18 = int_to_ptr.vmem [resolvable:$false] %s904_s18 }
  0xb5   : > { %s906_s13 = scalar_lea.vmem %s905_s18, 64  ;;  %p907_p10 = scmp.lt.s32.totalorder %s1282_s22, %s905_s18 }
  0xb6   : > { %p903_p8 = pneg %p902_p2  ;;  %p908_p3 = scmp.lt.s32.totalorder %s906_s13, %s900_s25 }
  0xb8   : > { %p909_p13 = por %p908_p3, %p907_p10 }
  0xba   : > { %p910_p0 = pnand %p909_p13, %p903_p8 }
  0xbc   : > { %913 = shalt.err (!%p910_p0)
}
  0xbd   : > { %s914_s29 = scalar_lea.hbm %s619_s26, 32  ;;  %s918_s28 = scalar_lea.hbm %s1343_s1, 960 }
  0xbe   : > { %p915_p5 = scmp.ne.s32.totalorder %s619_s26, %s914_s29  ;;  %p919_p11 = scmp.lt.u32.totalorder %s619_s26, %s1343_s1 }
  0xbf   : > { %p920_p7 = scmp.lt.u32.totalorder %s918_s28, %s914_s29  ;;  %p922_p4 = scmp.lt.u32.totalorder %s914_s29, %s619_s26 }
  0xc0   : > { %p916_p6 = pnand %p915_p5, %p1352_p12 }
  0xc1   : > { %p921_p1 = por %p920_p7, %p919_p11 }
  0xc2   : > { %p917_p9 = pneg %p916_p6 }
  0xc3   : > { %p923_p2 = por %p922_p4, %p921_p1 }
  0xc5   : > { %p924_p8 = pnand %p923_p2, %p917_p9 }
  0xc7   : > { %927 = shalt.err (!%p924_p8)
}
  0xc8   : > { %756 = dma.vmem_to_hbm [thread:$0]  (%p1352_p12), %s1282_s22, 32, %s619_s26, %s604_s27  }
  0xc9 PF: > { %p767_p10 = scmp.ge.s32.totalorder %s1022_s16, 2  ;;  %s633_s21 = sand.u32 1, %s982_s6  }
  0xca   : > { %p1353_p3 = scmp.ne.s32.totalorder %s1348_s5, 0  ;;  %s634_s23 = scalar_lea.sflag [#allocation5], %s633_s21 }
  0xcc   : > { %p763_p13 = pnand %p767_p10, %p1353_p3 }
  0xce   : > { %977 = dma.done.wait (!%p763_p13), %s634_s23, 32  }
  0xcf   : > { %979 = vsyncadd (!%p763_p13), %s634_s23, 4294967264  ;;  %s17_s16 = sadd.s32 1, %s1022_s16   ;;  %s1354_s6 = smov %s986_s7 }
  0xd0   : > { %p14_p0 = scmp.ge.s32.totalorder %s17_s16, 32   ;;  %s1355_s7 = smov %s990_s8 }
  0xd1   : > { %s1356_s8 = smov %s1138_s4  ;;  %s1357_s9 = smov %s998_s10 }
  0xd2   : > { %s1358_s10 = smov %s1002_s11  ;;  %s1359_s11 = smov %s1127_s30 }
  0xd3   : > { %s1360_s12 = smov %s1014_s14  ;;  %s1361_s13 = smov %s1018_s15 }
  0xd4   : > { %s1362_s14 = smov %s1365_s19  ;;  %s1363_s15 = smov %s1369_s20 }
  0xd5   :  { %16 = sbr.rel (!%p14_p0) target bundleno = 9 (0x9), region = 81 }
  0xdc   :  { %639 = vsyncpa [#allocation4], 1 }
  0xdd   :  { %641 = vsyncpa [#allocation4 + $0x1], 1 }
  0xde   :  { %642 = vsyncpa [#allocation5], 1 }
  0xdf   :  { %644 = vsyncpa [#allocation5 + $0x1], 1 }

</bundles_post_ra>
